<compile_context>
chip_gen: v6e
topology: v6e:2x2x1
jax: 0.10.0
libtpu: 0.0.40
codegen_flags: <defaults>
</compile_context>

<pallas_src>
import math
import numpy as np
import jax
import jax.numpy as jnp
from jax import lax
from jax.experimental import pallas as pl
from jax.experimental.pallas import tpu as pltpu

FILTER_SIZE = 2
N_LAYERS = 1
STRIDE = 1        # filename `..._s_1` -> stride=1
PADDING = 1       # filename `..._p_1` -> padding=1
N_WIRES = FILTER_SIZE ** 2          # 4 qubits
DIM = 2 ** N_WIRES                  # 16 amplitudes
MAX_TN = 16384                      # max patches per grid step (lane-dense tile)


# ---------------------------------------------------------------------------
# Circuit construction (deterministic, plain numpy glue)
# ---------------------------------------------------------------------------
def _ry(theta):
    c, s = math.cos(theta / 2.0), math.sin(theta / 2.0)
    return np.array([[c, -s], [s, c]], dtype=np.float64)


def _single_qubit_on_wire(gate, wire, n_wires):
    # wire 0 = most significant bit (PennyLane convention)
    mats = [np.eye(2)] * n_wires
    mats[wire] = gate
    out = mats[0]
    for m in mats[1:]:
        out = np.kron(out, m)
    return out


def _cnot(control, target, n_wires):
    dim = 2 ** n_wires
    u = np.zeros((dim, dim), dtype=np.float64)
    for s in range(dim):
        bits = [(s >> (n_wires - 1 - w)) & 1 for w in range(n_wires)]
        if bits[control] == 1:
            bits[target] ^= 1
        t = 0
        for b in bits:
            t = (t << 1) | b
        u[t, s] = 1.0
    return u


def build_circuit_matrices(rand_params):
    """Return (U, S_T): U = fixed (16,16) real unitary of the trainable layer,
    S_T = (4,16) PauliZ sign matrix so that <Z> = S_T @ |psi|^2 (column-state)."""
    # TODO(synk): PennyLane's qml.templates.RandomLayers draws a pseudo-random gate
    # structure (RX/RY/RZ on random wires + random CNOTs, seed=42). We substitute a
    # deterministic real-valued structure (RY(theta_w) on wire w, then a CNOT chain)
    # so the circuit stays real and exactly simulable; semantics otherwise identical.
    u = np.eye(DIM)
    for w in range(N_WIRES):
        u = _single_qubit_on_wire(_ry(float(rand_params[0, w])), w, N_WIRES) @ u
    for c_w in range(N_WIRES - 1):
        u = _cnot(c_w, c_w + 1, N_WIRES) @ u

    signs_t = np.zeros((N_WIRES, DIM), dtype=np.float64)
    for idx in range(DIM):
        for w in range(N_WIRES):
            bit = (idx >> (N_WIRES - 1 - w)) & 1
            signs_t[w, idx] = 1.0 - 2.0 * bit
    return u.astype(np.float32), signs_t.astype(np.float32)


# ---------------------------------------------------------------------------
# Pallas kernel: per-patch 4-qubit state-vector simulation (lane-dense layout)
# ---------------------------------------------------------------------------
def quanv_kernel(p_ref, u_ref, st_ref, o_ref):
    # p_ref  : (4, TN)   patch pixel values (channel 0 of each 2x2 window), patch = lane
    # u_ref  : (16, 16)  layer unitary U (column-state convention)
    # st_ref : (4, 16)   PauliZ sign matrix transposed
    # o_ref  : (4, TN)   PauliZ expectation values per patch
    p = p_ref[...]
    half = p * (math.pi * 0.5)                  # RY(pi*x) -> half-angle pi*x/2

    # Single EUP pass over a packed (8, TN) slab:
    #   rows 0..3 -> sin(pi*x/2)          = |1> amplitude per wire
    #   rows 4..7 -> sin(pi*x/2 + pi/2)   = cos(pi*x/2) = |0> amplitude per wire
    ang8 = jnp.concatenate([half, half + (math.pi * 0.5)], axis=0)   # (8, TN)
    trig = jnp.sin(ang8)                                             # (8, TN)

    def s_row(w):                       # amplitude of |1> on wire w, shape (1, TN)
        return trig[w:w + 1, :]

    def c_row(w):                       # amplitude of |0> on wire w, shape (1, TN)
        return trig[4 + w:5 + w, :]

    # Staged Kronecker build of the product state (wire 0 = MSB of the basis index).
    # Each stage: sublane concat (XLU slot) + one broadcasted multiply (VALU).
    # Total multiplies ~ (4 + 8 + 16) * TN, vs. ~112 * TN for a where-chain.
    psi0 = jnp.concatenate([c_row(3), s_row(3)], axis=0)             # (2, TN)
    for w in (2, 1, 0):
        psi0 = jnp.concatenate([psi0 * c_row(w), psi0 * s_row(w)], axis=0)
    # psi0: (16, TN)

    # MXU: U (16,16) streams as LHS, each (16,128) psi0 chunk is the latched RHS in its
    # natural (sublane=contraction, lane=patch) layout -> no XLU transpose inserted.
    psi = jnp.dot(u_ref[...], psi0, preferred_element_type=jnp.float32)     # (16, TN)
    probs = psi * psi
    o_ref[...] = jnp.dot(st_ref[...], probs, preferred_element_type=jnp.float32)  # (4, TN)


# ---------------------------------------------------------------------------
# Wrapper: patch extraction (glue) + pallas_call
# ---------------------------------------------------------------------------
def _round_up(x, m):
    return ((x + m - 1) // m) * m


def _choose_grid(n):
    """Return (tile_lanes, num_steps).  One fat step when the problem fits (best on
    single-TC v5e/v6e, negligible loss on v7x); otherwise an even number of equal
    steps so v7x's two TensorCores get balanced 'parallel' work."""
    n128 = _round_up(max(n, 1), 128)
    if n128 <= MAX_TN:
        return n128, 1
    steps = -(-n128 // MAX_TN)          # cdiv
    if steps % 2:
        steps += 1                      # even step count for 2-TC load balance
    tn = _round_up(-(-n // steps), 128)
    return tn, steps


def quanvolutional_forward(x, u, signs_t, *,
                           filter_size=FILTER_SIZE, stride=STRIDE, padding=PADDING):
    b, ch, h, w = x.shape
    ho = (h + 2 * padding - filter_size) // stride + 1
    wo = (w + 2 * padding - filter_size) // stride + 1

    # The reference circuit only consumes inputs[0:filter_size**2] of the flattened
    # (C, fs, fs) patch -> i.e. only channel 0's 2x2 window (row-major).  Extract and
    # pad channel 0 only, and build (4, N) directly (patch index on the lane axis) so
    # the per-step DMA is a contiguous lane-dense row slab.
    x0 = x[:, 0]
    if padding:
        x0 = jnp.pad(x0, ((0, 0), (padding, padding), (padding, padding)))
    rows = []
    for di in range(filter_size):
        for dj in range(filter_size):
            rows.append(
                x0[:, di:di + stride * ho:stride, dj:dj + stride * wo:stride].reshape(-1))
    patches = jnp.stack(rows, axis=0).astype(jnp.float32)        # (4, B*Ho*Wo)

    n = patches.shape[1]
    tn, steps = _choose_grid(n)
    n_pad = tn * steps
    if n_pad != n:
        patches = jnp.pad(patches, ((0, 0), (0, n_pad - n)))

    u_f32 = jnp.asarray(u, dtype=jnp.float32)          # (16, 16)
    st_f32 = jnp.asarray(signs_t, dtype=jnp.float32)   # (4, 16)

    nq = filter_size ** 2
    out = pl.pallas_call(
        quanv_kernel,
        out_shape=jax.ShapeDtypeStruct((nq, n_pad), jnp.float32),
        grid_spec=pltpu.PrefetchScalarGridSpec(
            num_scalar_prefetch=0,
            grid=(steps,),
            in_specs=[
                pl.BlockSpec((nq, tn), lambda i: (0, i)),
                pl.BlockSpec((DIM, DIM), lambda i: (0, 0)),   # resident across steps
                pl.BlockSpec((nq, DIM), lambda i: (0, 0)),    # resident across steps
            ],
            out_specs=pl.BlockSpec((nq, tn), lambda i: (0, i)),
        ),
        compiler_params=pltpu.CompilerParams(dimension_semantics=("parallel",)),
    )(patches, u_f32, st_f32)

    out = out[:, :n].reshape(nq, b, ho, wo)
    return jnp.transpose(out, (1, 0, 2, 3))            # (B, fs**2, Ho, Wo) — PyTorch layout


# ---------------------------------------------------------------------------
# Pure-numpy reference (same math) for a correctness check
# ---------------------------------------------------------------------------
def _reference(x, u, signs_t, *, filter_size, stride, padding):
    x = np.asarray(x, dtype=np.float64)
    b, ch, h, w = x.shape
    xp = np.pad(x, ((0, 0), (0, 0), (padding, padding), (padding, padding)))
    ho = (h + 2 * padding - filter_size) // stride + 1
    wo = (w + 2 * padding - filter_size) // stride + 1
    u64 = np.asarray(u, np.float64)
    s64 = np.asarray(signs_t, np.float64).T            # (16, 4)
    out = np.zeros((b, filter_size ** 2, ho, wo), dtype=np.float64)
    for i in range(ho):
        for j in range(wo):
            rs, cs = i * stride, j * stride
            patch = xp[:, :, rs:rs + filter_size, cs:cs + filter_size].reshape(b, -1)
            p = patch[:, :filter_size ** 2]
            ang = p * (np.pi / 2.0)
            c, s = np.cos(ang), np.sin(ang)
            psi0 = np.ones((b, DIM))
            for wi in range(N_WIRES):
                bit = np.array([(idx >> (N_WIRES - 1 - wi)) & 1 for idx in range(DIM)],
                               dtype=np.float64)[None, :]
                psi0 = psi0 * (c[:, wi:wi + 1] * (1 - bit) + s[:, wi:wi + 1] * bit)
            psi = psi0 @ u64.T
            out[:, :, i, j] = (psi ** 2) @ s64
    return out.astype(np.float32)


if __name__ == "__main__":
    # Deterministic "quantum" layer parameters (mirrors np.random.uniform(0, 2*pi, (1, 4)))
    rand_params = np.random.default_rng(0).uniform(0.0, 2.0 * np.pi, size=(N_LAYERS, N_WIRES))
    U, S_T = build_circuit_matrices(rand_params)

    key = jax.random.PRNGKey(0)
    x = jax.random.uniform(key, (2, 3, 16, 16), dtype=jnp.float32)   # small CIFAR-like NCHW

    y = quanvolutional_forward(x, U, S_T)
    y = jax.block_until_ready(y)

    y_ref = _reference(np.asarray(x), U, S_T,
                       filter_size=FILTER_SIZE, stride=STRIDE, padding=PADDING)
    assert y.shape == y_ref.shape, (y.shape, y_ref.shape)
    np.testing.assert_allclose(np.asarray(y), y_ref, rtol=1e-4, atol=1e-4)

    print("KERNEL_OK")
</pallas_src>

<mosaic_0001>
module attributes {stable_mosaic.version = 11 : i64} {
  func.func @quanv_kernel(%arg0: i32, %arg1: memref<4x640xf32, #tpu.memory_space<vmem>>, %arg2: memref<16x16xf32, #tpu.memory_space<vmem>>, %arg3: memref<4x16xf32, #tpu.memory_space<vmem>>, %arg4: memref<4x640xf32, #tpu.memory_space<vmem>>) attributes {dimension_semantics = [#tpu.dimension_semantics<parallel>], iteration_bounds = array<i64: 1>, scalar_prefetch = 0 : i64, scratch_operands = 0 : i64, tpu.core_type = #tpu.core_type<tc>, window_params = [{transform_indices = @transform_0, window_bounds = array<i64: 4, 640>}, {pipeline_mode = #tpu.pipeline_mode<synchronous>, transform_indices = @transform_1, window_bounds = array<i64: 16, 16>}, {pipeline_mode = #tpu.pipeline_mode<synchronous>, transform_indices = @transform_2, window_bounds = array<i64: 4, 16>}, {transform_indices = @transform_3, window_bounds = array<i64: 4, 640>}]} {
    %c0 = arith.constant 0 : index
    %c0_0 = arith.constant 0 : index
    %0 = vector.load %arg1[%c0, %c0_0] : memref<4x640xf32, #tpu.memory_space<vmem>>, vector<4x640xf32>
    %cst = arith.constant 1.57079637 : f32
    %1 = vector.broadcast %cst : f32 to vector<4x640xf32>
    %2 = arith.mulf %0, %1 : vector<4x640xf32>
    %cst_1 = arith.constant 1.57079637 : f32
    %3 = vector.broadcast %cst_1 : f32 to vector<4x640xf32>
    %4 = arith.addf %2, %3 : vector<4x640xf32>
    %5 = tpu.concatenate %2, %4 in 0 : vector<4x640xf32>, vector<4x640xf32> -> vector<8x640xf32>
    %6 = math.sin %5 : vector<8x640xf32>
    %7 = vector.extract_strided_slice %6 {offsets = [7, 0], sizes = [1, 640], strides = [1, 1]} : vector<8x640xf32> to vector<1x640xf32>
    %8 = vector.extract_strided_slice %6 {offsets = [3, 0], sizes = [1, 640], strides = [1, 1]} : vector<8x640xf32> to vector<1x640xf32>
    %9 = tpu.concatenate %7, %8 in 0 : vector<1x640xf32>, vector<1x640xf32> -> vector<2x640xf32>
    %10 = vector.extract_strided_slice %6 {offsets = [6, 0], sizes = [1, 640], strides = [1, 1]} : vector<8x640xf32> to vector<1x640xf32>
    %11 = vector.broadcast %10 : vector<1x640xf32> to vector<2x640xf32>
    %12 = arith.mulf %9, %11 : vector<2x640xf32>
    %13 = vector.extract_strided_slice %6 {offsets = [2, 0], sizes = [1, 640], strides = [1, 1]} : vector<8x640xf32> to vector<1x640xf32>
    %14 = vector.broadcast %13 : vector<1x640xf32> to vector<2x640xf32>
    %15 = arith.mulf %9, %14 : vector<2x640xf32>
    %16 = tpu.concatenate %12, %15 in 0 : vector<2x640xf32>, vector<2x640xf32> -> vector<4x640xf32>
    %17 = vector.extract_strided_slice %6 {offsets = [5, 0], sizes = [1, 640], strides = [1, 1]} : vector<8x640xf32> to vector<1x640xf32>
    %18 = vector.broadcast %17 : vector<1x640xf32> to vector<4x640xf32>
    %19 = arith.mulf %16, %18 : vector<4x640xf32>
    %20 = vector.extract_strided_slice %6 {offsets = [1, 0], sizes = [1, 640], strides = [1, 1]} : vector<8x640xf32> to vector<1x640xf32>
    %21 = vector.broadcast %20 : vector<1x640xf32> to vector<4x640xf32>
    %22 = arith.mulf %16, %21 : vector<4x640xf32>
    %23 = tpu.concatenate %19, %22 in 0 : vector<4x640xf32>, vector<4x640xf32> -> vector<8x640xf32>
    %24 = vector.extract_strided_slice %6 {offsets = [4, 0], sizes = [1, 640], strides = [1, 1]} : vector<8x640xf32> to vector<1x640xf32>
    %25 = vector.broadcast %24 : vector<1x640xf32> to vector<8x640xf32>
    %26 = arith.mulf %23, %25 : vector<8x640xf32>
    %27 = vector.extract_strided_slice %6 {offsets = [0, 0], sizes = [1, 640], strides = [1, 1]} : vector<8x640xf32> to vector<1x640xf32>
    %28 = vector.broadcast %27 : vector<1x640xf32> to vector<8x640xf32>
    %29 = arith.mulf %23, %28 : vector<8x640xf32>
    %30 = tpu.concatenate %26, %29 in 0 : vector<8x640xf32>, vector<8x640xf32> -> vector<16x640xf32>
    %c0_2 = arith.constant 0 : index
    %c0_3 = arith.constant 0 : index
    %31 = vector.load %arg2[%c0_2, %c0_3] : memref<16x16xf32, #tpu.memory_space<vmem>>, vector<16x16xf32>
    %cst_4 = arith.constant dense<0.000000e+00> : vector<16x640xf32>
    %32 = tpu.matmul %31, %30, %cst_4 {dimension_numbers = #tpu.dot_dimension_numbers<[1], [0], [0], [1], [0, 0, 1, 1], [], []>} : vector<16x16xf32>, vector<16x640xf32>, vector<16x640xf32> -> vector<16x640xf32>
    %33 = arith.mulf %32, %32 : vector<16x640xf32>
    %c0_5 = arith.constant 0 : index
    %c0_6 = arith.constant 0 : index
    %34 = vector.load %arg3[%c0_5, %c0_6] : memref<4x16xf32, #tpu.memory_space<vmem>>, vector<4x16xf32>
    %cst_7 = arith.constant dense<0.000000e+00> : vector<4x640xf32>
    %35 = tpu.matmul %34, %33, %cst_7 {dimension_numbers = #tpu.dot_dimension_numbers<[1], [0], [0], [1], [0, 0, 1, 1], [], []>} : vector<4x16xf32>, vector<16x640xf32>, vector<4x640xf32> -> vector<4x640xf32>
    %c0_8 = arith.constant 0 : index
    %c0_9 = arith.constant 0 : index
    %36 = vector.load %arg4[%c0_8, %c0_9] : memref<4x640xf32, #tpu.memory_space<vmem>>, vector<4x640xf32>
    tpu.vector_store %arg4[%c0_8, %c0_9], %35 {strides = array<i32>} : memref<4x640xf32, #tpu.memory_space<vmem>>, vector<4x640xf32>,
    return
  }
  func.func @transform_0(%arg0: i32) -> (i32, i32) {
    %c0_i32 = arith.constant 0 : i32
    %c0_i32_0 = arith.constant 0 : i32
    return %c0_i32, %arg0 : i32, i32
  }
  func.func @transform_1(%arg0: i32) -> (i32, i32) {
    %c0_i32 = arith.constant 0 : i32
    %c0_i32_0 = arith.constant 0 : i32
    %c0_i32_1 = arith.constant 0 : i32
    return %c0_i32, %c0_i32_0 : i32, i32
  }
  func.func @transform_2(%arg0: i32) -> (i32, i32) {
    %c0_i32 = arith.constant 0 : i32
    %c0_i32_0 = arith.constant 0 : i32
    %c0_i32_1 = arith.constant 0 : i32
    return %c0_i32, %c0_i32_0 : i32, i32
  }
  func.func @transform_3(%arg0: i32) -> (i32, i32) {
    %c0_i32 = arith.constant 0 : i32
    %c0_i32_0 = arith.constant 0 : i32
    return %c0_i32, %arg0 : i32, i32
  }
}

</mosaic_0001>

<bundles_post_ra>
// kernel: tpu_custom_call.1
= control target key start
LH: loop header
LB: loop body
LE: loop exit
PB: predicated region body
PF: predicated region fallthrough
CT: control target
= control target key end

     0   :  { %8 = vsyncpa [#allocation3], 0  ;;  %s2150_s0 = inlined_call_operand.hbm [shape: f32[4,640], index: 0, kind: input, shape index: {}]   ;;  %s2151_s1 = inlined_call_operand.hbm [shape: f32[16,16], index: 1, kind: input, shape index: {}]   ;;  %s2152_s2 = inlined_call_operand.hbm [shape: f32[4,16], index: 2, kind: input, shape index: {}]   ;;  %s2153_s3 = inlined_call_operand.hbm [shape: f32[4,640], index: 3, kind: output, shape index: {}]  }
   0x1   :  { %9 = vsyncpa [#allocation6], 0 }
   0x2   :  { %10 = vsyncpa [#allocation4], 0  ;;  %s1505_s12 = smov [#allocation5]  }
   0x3   :  { %s26_s13 = sshll.u32 %s1505_s12, 4  ;;  %s27_s13 = int_to_ptr.vmem [resolvable:$true] %s26_s13 }
   0x4   :  { %s1427_s14 = scalar_lea.vmem %s27_s13, 256  ;;  %p1432_p1 = scmp.lt.s32.totalorder %s27_s13, %s27_s13 }
   0x5   :  { %p1428_p0 = scmp.ne.s32.totalorder %s27_s13, %s1427_s14  ;;  %p1433_p2 = scmp.lt.s32.totalorder %s1427_s14, %s1427_s14 }
   0x7   :  { %p1434_p3 = por %p1433_p2, %p1432_p1 }
   0x9   :  { %p1435_p4 = pnand %p1434_p3, %p1428_p0 }
   0xb   :  { %1438 = shalt.err (!%p1435_p4)
}
   0xc   :  { %s1506_s15 = smov 128   ;;  %s1507_s16 = smov 8  }
   0xd   :  { %32 = dma.hbm_to_vmem [thread:$0]  %s2151_s1, 256, %s27_s13, [#allocation6], %s1506_s15, %s1506_s15, %s1507_s16  }
   0xe   :  { %s1508_s19 = smov [#allocation2]   ;;  %s1509_s21 = smov [#allocation7]  }
   0xf   :  { %s17_s20 = sshll.u32 %s1508_s19, 4  ;;  %s39_s22 = sshll.u32 %s1509_s21, 4  ;;  %s18_s20 = int_to_ptr.vmem [resolvable:$true] %s17_s20  ;;  %s40_s22 = int_to_ptr.vmem [resolvable:$true] %s39_s22 }
  0x10   :  { %s1447_s23 = scalar_lea.vmem %s18_s20, 320  ;;  %p1452_p6 = scmp.lt.s32.totalorder %s18_s20, %s18_s20 }
  0x11   :  { %p1448_p5 = scmp.ne.s32.totalorder %s18_s20, %s1447_s23  ;;  %p1453_p7 = scmp.lt.s32.totalorder %s1447_s23, %s1447_s23 }
  0x13   :  { %p1454_p8 = por %p1453_p7, %p1452_p6 }
  0x15   :  { %p1455_p9 = pnand %p1454_p8, %p1448_p5 }
  0x17   :  { %1458 = shalt.err (!%p1455_p9)
}
  0x18   :  { %20 = dma.hbm_to_vmem [thread:$0]  %s2150_s0, 320, %s18_s20, [#allocation3]  }
  0x19   :  { %s1467_s26 = scalar_lea.vmem %s40_s22, 64  ;;  %p1472_p11 = scmp.lt.s32.totalorder %s40_s22, %s40_s22 }
  0x1a   :  { %p1468_p10 = scmp.ne.s32.totalorder %s40_s22, %s1467_s26  ;;  %p1473_p12 = scmp.lt.s32.totalorder %s1467_s26, %s1467_s26 }
  0x1c   :  { %p1474_p13 = por %p1473_p12, %p1472_p11 }
  0x1e   :  { %p1475_p0 = pnand %p1474_p13, %p1468_p10 }
  0x20   :  { %1478 = shalt.err (!%p1475_p0)
}
  0x21   :  { %42 = dma.hbm_to_vmem [thread:$0]  %s2152_s2, 64, %s40_s22, [#allocation6]  }
  0x22   :  { %1499 = dma.done.wait [#allocation3], 320  }
  0x23   :  { %1500 = vsyncadd [#allocation3], 4294966976 }
  0x24   :  { %1501 = dma.done.wait [#allocation6], 320  }
  0x25   :  { %1502 = vsyncadd [#allocation6], 4294966976  ;;  %v52_v0 = vld [vmem:[#allocation2] sm:$0xff]  ;;  %v53_v1 = vld [vmem:[#allocation2 + $0x8] sm:$0xff]  ;;  %vm76_vm0 = vcmask 1043456   ;;  %v633_v24 = vlaneseq  ;;  %s1518_s0 = smov [#allocation8]  }
  0x26   :  { %v55_v2 = vmul.f32 1.5707964, %v52_v0  ;;  %v1548_v3 = vmul.f32 1.5707964, %v53_v1  ;;  %v1510_v41 = vmov 683565275  }
  0x27   :  { %v1511_v43 = vmov 2475754826   ;;  %v1512_v45 = vmov 2131351028   ;;  %v1513_v47 = vmov 2102212464  }
  0x28   :  { %v58_v4 = vadd.f32 1.5707964, %v55_v2  ;;  %v63_v5 = vcombine.high %v55_v2, %v55_v2  ;;  %v1551_v6 = vadd.f32 1.5707964, %v1548_v3  ;;  %v64_v7 = vcombine.high %v1548_v3, %v1548_v3  ;;  %s1305_s2 = sshll.u32 %s1518_s0, 4  ;;  %s1306_s2 = int_to_ptr.vmem [resolvable:$true] %s1305_s2 }
  0x29   :  { %v1514_v49 = vmov 920167782   ;;  %v1515_v57 = vmov 1326507024   ;;  %s1479_s28 = scalar_lea.vmem %s1306_s2, 320  ;;  %p1484_p2 = scmp.lt.s32.totalorder %s1306_s2, %s1306_s2 }
  0x2a   :  { %v1556_v8 = vsel %vm76_vm0, %v63_v5, %v58_v4  ;;  %v1560_v9 = vsel %vm76_vm0, %v64_v7, %v1551_v6  ;;  %v70_v10 = vcombine.low %v58_v4, %v58_v4  ;;  %v71_v31 = vcombine.low %v1551_v6, %v1551_v6  ;;  %p1480_p1 = scmp.ne.s32.totalorder %s1306_s2, %s1479_s28  ;;  %p1485_p3 = scmp.lt.s32.totalorder %s1479_s28, %s1479_s28 }
  0x2b   :  { %v186_v11 = vand.u32 2147483647, %v1556_v8  ;;  %v189_v12 = vand.u32 2139095040, %v1556_v8  ;;  %v394_v13 = vand.u32 2147483647, %v1560_v9  ;;  %v397_v14 = vand.u32 2139095040, %v1560_v9 }
  0x2c   :  { %v1567_v16 = vsel %vm76_vm0, %v55_v2, %v70_v10  ;;  %vm188_vm14 = vcmp.lt.s32.totalorder %v1556_v8, 0  ;;  %p1486_p4 = por %p1485_p3, %p1484_p2 }
  0x2d   :  { %v190_v15 = vshrl.u32 %v189_v12, 23  ;;  %v193_v17 = vand.u32 8388607, %v186_v11  ;;  %v398_v18 = vshrl.u32 %v397_v14, 23  ;;  %v401_v19 = vand.u32 8388607, %v394_v13 }
  0x2e   :  { %v85_v21 = vand.u32 2139095040, %v1567_v16  ;;  %v82_v35 = vand.u32 2147483647, %v1567_v16  ;;  %p1487_p5 = pnand %p1486_p4, %p1480_p1 }
  0x2f   :  { %v1319_v20 = vadd.s32 4294967169, %v190_v15  ;;  %v1327_v22 = vadd.s32 4294967169, %v398_v18  ;;  %v194_v26 = vor.u32 8388608, %v193_v17  ;;  %v402_v27 = vor.u32 8388608, %v401_v19 }
  0x30   :  { %v86_v25 = vshrl.u32 %v85_v21, 23 }
  0x31   :  { %v196_v23 = vadd.s32 1, %v1319_v20  ;;  %v404_v28 = vadd.s32 1, %v1327_v22  ;;  %v1577_v36 = vshll.u32 %v194_v26, 8  ;;  %v1579_v38 = vshll.u32 %v402_v27, 8 }
  0x32   :  { %v1315_v29 = vadd.s32 4294967169, %v86_v25 }
  0x33   :  { %vm197_vm1 = vcmp.gt.s32.totalorder %v196_v23, 0  ;;  %vm405_vm2 = vcmp.gt.s32.totalorder %v404_v28, 0 }
  0x34   :  { %v198_v30 = vsel %vm197_vm1, %v196_v23, 0  ;;  %v406_v34 = vsel %vm405_vm2, %v404_v28, 0  ;;  %v1581_v39 = vadd.s32 1, %v1315_v29  ;;  %vm1722_vm2 = vcmp.le.f32.partialorder %v186_v11, 0.7853982 }
  0x35   :  { %v199_v32 = vshrl.u32 %v198_v30, 5  ;;  %v200_v33 = vand.u32 31, %v198_v30  ;;  %v408_v37 = vand.u32 31, %v406_v34  ;;  %v1588_v51 = vshrl.u32 %v406_v34, 5 }
  0x36   :  { %vm93_vm12 = vcmp.gt.s32.totalorder %v1581_v39, 0 }
  0x37   :  { %v201_v40 = vsub.s32 32, %v200_v33  ;;  %v203_v42 = vshll.u32 %v1510_v41, %v200_v33  ;;  %v206_v44 = vshll.u32 %v1511_v43, %v200_v33  ;;  %v209_v46 = vshll.u32 %v1512_v45, %v200_v33 }
  0x38   :  { %v212_v48 = vshll.u32 %v1513_v47, %v200_v33  ;;  %v215_v50 = vshll.u32 %v1514_v49, %v200_v33  ;;  %vm218_vm3 = vcmp.lt.s32.totalorder %v199_v32, 1  ;;  %vm219_vm4 = vcmp.lt.s32.totalorder %v199_v32, 2 }
  0x39   :  { %v202_v52 = vshrl.u32 %v1510_v41, %v201_v40  ;;  %v204_v53 = vshrl.u32 %v1511_v43, %v201_v40  ;;  %v207_v54 = vshrl.u32 %v1512_v45, %v201_v40  ;;  %v210_v55 = vshrl.u32 %v1513_v47, %v201_v40 }
  0x3a   :  { %v213_v56 = vshrl.u32 %v1514_v49, %v201_v40  ;;  %v216_v58 = vshrl.u32 %v1515_v57, %v201_v40  ;;  %vm221_vm5 = vcmp.lt.s32.totalorder %v199_v32, 4  ;;  %v409_v62 = vsub.s32 32, %v408_v37 }
  0x3b   :  { %v205_v59 = vor.u32 %v204_v53, %v203_v42  ;;  %v208_v60 = vor.u32 %v207_v54, %v206_v44  ;;  %v211_v61 = vor.u32 %v210_v55, %v209_v46  ;;  %vm220_vm6 = vcmp.lt.s32.totalorder %v199_v32, 3 }
  0x3c   :  { %v214_v63 = vor.u32 %v213_v56, %v212_v48  ;;  %v217_v0 = vor.u32 %v216_v58, %v215_v50  ;;  %v411_v1 = vshll.u32 %v1510_v41, %v408_v37  ;;  %v414_v15 = vshll.u32 %v1511_v43, %v408_v37 }
  0x3d   :  { %v222_v2 = vsel %vm218_vm3, %v202_v52, %v205_v59  ;;  %v223_v4 = vsel %vm221_vm5, %v211_v61, 2102212464  ;;  %v226_v5 = vsel %vm218_vm3, %v205_v59, %v208_v60  ;;  %v230_v7 = vsel %vm218_vm3, %v208_v60, %v211_v61 }
  0x3e   :  { %v224_v10 = vsel %vm220_vm6, %v208_v60, %v223_v4  ;;  %v227_v12 = vsel %vm221_vm5, %v214_v63, 920167782  ;;  %v231_v14 = vsel %vm221_vm5, %v217_v0, 1326507024  ;;  %v410_v19 = vshrl.u32 %v1510_v41, %v409_v62 }
  0x3f   :  { %v228_v17 = vsel %vm220_vm6, %v211_v61, %v227_v12  ;;  %v232_v18 = vsel %vm220_vm6, %v214_v63, %v231_v14  ;;  %v412_v20 = vshrl.u32 %v1511_v43, %v409_v62  ;;  %v225_v21 = vsel %vm219_vm4, %v222_v2, %v224_v10  ;;  %v54_v12 = vld [vmem:[#allocation2 + $0x10] sm:$0xf] }
  0x40   :  { %v229_v22 = vsel %vm219_vm4, %v226_v5, %v228_v17  ;;  %v233_v23 = vsel %vm219_vm4, %v230_v7, %v232_v18  ;;  %v415_v25 = vshrl.u32 %v1512_v45, %v409_v62  ;;  %v417_v34 = vshll.u32 %v1512_v45, %v408_v37 }
  0x41   :  { %v1608_v26 = vmul.u32.u64.low %v1577_v36, %v233_v23  ;;  %v1609_v27 = vmul.u32.u64.high %v1577_v36, %v233_v23, %v1608_v26  ;;  %v1612_v28 = vmul.u32.u64.low %v1577_v36, %v229_v22  ;;  %v1613_v29 = vmul.u32.u64.high %v1577_v36, %v229_v22, %v1612_v28 }
  0x42   :  { %v413_v30 = vor.u32 %v412_v20, %v411_v1  ;;  %v416_v33 = vor.u32 %v415_v25, %v414_v15  ;;  %v418_v40 = vshrl.u32 %v1513_v47, %v409_v62  ;;  %v420_v32 = vshll.u32 %v1513_v47, %v408_v37 }
  0x43   :  { %v421_v42 = vshrl.u32 %v1514_v49, %v409_v62  ;;  %v423_v44 = vshll.u32 %v1514_v49, %v408_v37  ;;  %v424_v46 = vshrl.u32 %v1515_v57, %v409_v62  ;;  %v241_v48 = vmul.u32 %v1577_v36, %v225_v21 }
  0x44   :  { %v419_v50 = vor.u32 %v418_v40, %v417_v34  ;;  %vm426_vm7 = vcmp.lt.s32.totalorder %v1588_v51, 1  ;;  %vm427_vm8 = vcmp.lt.s32.totalorder %v1588_v51, 2  ;;  %vm243_vm9 = vc.u32 %v1609_v27, %v1612_v28 }
  0x45   :  { %v244_v52 = vadd.s32 1, %v1613_v29  ;;  %v422_v53 = vor.u32 %v421_v42, %v420_v32  ;;  %vm428_vm10 = vcmp.lt.s32.totalorder %v1588_v51, 3  ;;  %v425_v54 = vor.u32 %v424_v46, %v423_v44 }
  0x46   :  { %vm429_vm11 = vcmp.lt.s32.totalorder %v1588_v51, 4  ;;  %v430_v37 = vsel %vm426_vm7, %v410_v19, %v413_v30  ;;  %v434_v55 = vsel %vm426_vm7, %v413_v30, %v416_v33  ;;  %v438_v59 = vsel %vm426_vm7, %v416_v33, %v419_v50 }
  0x47   :  { %v245_v36 = vsel %vm243_vm9, %v244_v52, %v1613_v29  ;;  %v431_v56 = vsel %vm429_vm11, %v419_v50, 2102212464  ;;  %v435_v58 = vsel %vm429_vm11, %v422_v53, 920167782  ;;  %v439_v63 = vsel %vm429_vm11, %v425_v54, 1326507024 }
  0x48   :  { %v246_v60 = vadd.s32 %v245_v36, %v241_v48  ;;  %v432_v61 = vsel %vm428_vm10, %v416_v33, %v431_v56  ;;  %v436_v62 = vsel %vm428_vm10, %v419_v50, %v435_v58  ;;  %v440_v2 = vsel %vm428_vm10, %v422_v53, %v439_v63 }
  0x49   :  { %v433_v0 = vsel %vm427_vm8, %v430_v37, %v432_v61  ;;  %v437_v1 = vsel %vm427_vm8, %v434_v55, %v436_v62  ;;  %v441_v5 = vsel %vm427_vm8, %v438_v59, %v440_v2  ;;  %v1644_v14 = vshrl.u32 %v633_v24, 7 }
  0x4a   :  { %v247_v4 = vadd.s32 536870912, %v246_v60  ;;  %v1639_v7 = vmul.u32.u64.low %v1579_v38, %v437_v1  ;;  %v1640_v10 = vmul.u32.u64.high %v1579_v38, %v437_v1, %v1639_v7  ;;  %v94_v18 = vsel %vm93_vm12, %v1581_v39, 0 }
  0x4b   :  { %v1647_v15 = vmul.u32.u64.low %v1579_v38, %v441_v5  ;;  %v1648_v17 = vmul.u32.u64.high %v1579_v38, %v441_v5, %v1647_v15  ;;  %v96_v20 = vand.u32 31, %v94_v18  ;;  %v449_v51 = vmul.u32 %v1579_v38, %v433_v0 }
  0x4c   :  { %v1651_v19 = vshrl.u32 %v247_v4, 30  ;;  %v89_v21 = vand.u32 8388607, %v82_v35  ;;  %v1656_v22 = vmul.f32 1.5707964, %v54_v12  ;;  %v1660_v24 = vsub.s32 6, %v1644_v14 }
  0x4d   :  { %v452_v25 = vadd.s32 1, %v1640_v10  ;;  %v1668_v39 = vsel %vm76_vm0, %v1548_v3, %v71_v31  ;;  %v1671_v38 = vsub.s32 2, %v1644_v14  ;;  %v1674_v26 = vsub.s32 5, %v1644_v14 }
  0x4e   :  { %v249_v23 = vshll.u32 %v1651_v19, 30  ;;  %vm451_vm13 = vc.u32 %v1648_v17, %v1639_v7  ;;  %v97_v29 = vsub.s32 32, %v96_v20  ;;  %v1681_v33 = vsub.s32 1, %v1644_v14 }
  0x4f   :  { %v1684_v6 = vsub.s32 0, %v1644_v14  ;;  %v453_v3 = vsel %vm451_vm13, %v452_v25, %v1640_v10  ;;  %v90_v34 = vor.u32 8388608, %v89_v21  ;;  %v293_v40 = vand.u32 2139095040, %v1668_v39 }
  0x50   :  { %v1678_v30 = vsub.s32 %v246_v60, %v249_v23  ;;  %v454_v31 = vadd.s32 %v453_v3, %v449_v51  ;;  %v1689_v32 = vadd.f32 1.5707964, %v1656_v22  ;;  %v1692_v44 = vshrl.u32 %v94_v18, 5 }
  0x51   :  { %v99_v46 = vshll.u32 %v1510_v41, %v96_v20  ;;  %v102_v48 = vshll.u32 %v1511_v43, %v96_v20  ;;  %v100_v52 = vshrl.u32 %v1511_v43, %v97_v29  ;;  %v103_v53 = vshrl.u32 %v1512_v45, %v97_v29 }
  0x52   :  { %v252_v42 = vsub.s32 0, %v1678_v30  ;;  %v455_v50 = vadd.s32 536870912, %v454_v31  ;;  %v105_v54 = vshll.u32 %v1512_v45, %v96_v20  ;;  %v106_v55 = vshrl.u32 %v1513_v47, %v97_v29 }
  0x53   :  { %v108_v36 = vshll.u32 %v1513_v47, %v96_v20  ;;  %v109_v56 = vshrl.u32 %v1514_v49, %v97_v29  ;;  %v111_v59 = vshll.u32 %v1514_v49, %v96_v20  ;;  %v112_v60 = vshrl.u32 %v1515_v57, %v97_v29 }
  0x54   :  { %v1320_v37 = vmin.u32 %v252_v42, %v1678_v30  ;;  %v1703_v58 = vshrl.u32 %v455_v50, 30  ;;  %v290_v61 = vand.u32 2147483647, %v1668_v39  ;;  %v242_v62 = vadd.s32 %v1612_v28, %v1609_v27 }
  0x55   :  { %v1711_v0 = vshll.u32 %v90_v34, 8  ;;  %v294_v1 = vshrl.u32 %v293_v40, 23  ;;  %v98_v4 = vshrl.u32 %v1510_v41, %v97_v29  ;;  %v101_v5 = vor.u32 %v100_v52, %v99_v46 }
  0x56   :  { %v254_v63 = vclz %v1320_v37  ;;  %v457_v2 = vshll.u32 %v1703_v58, 30  ;;  %v104_v10 = vor.u32 %v103_v53, %v102_v48  ;;  %v107_v15 = vor.u32 %v106_v55, %v105_v54 }
  0x57   :  { %v110_v18 = vor.u32 %v109_v56, %v108_v36  ;;  %vm114_vm15 = vcmp.lt.s32.totalorder %v1692_v44, 1  ;;  %v272_v20 = vsub.s32 4, %v1651_v19  ;;  %v113_v27 = vor.u32 %v112_v60, %v111_v59 }
  0x58   :  { %v1321_v12 = vadd.s32 4294967294, %v254_v63  ;;  %v1717_v51 = vsub.s32 %v454_v31, %v457_v2  ;;  %vm117_vm1 = vcmp.lt.s32.totalorder %v1692_v44, 4  ;;  %vm115_vm4 = vcmp.lt.s32.totalorder %v1692_v44, 2 }
  0x59   :  { %vm116_vm5 = vcmp.lt.s32.totalorder %v1692_v44, 3  ;;  %v119_v21 = vsel %vm117_vm1, %v107_v15, 2102212464  ;;  %v118_v29 = vsel %vm114_vm15, %v98_v4, %v101_v5  ;;  %v122_v11 = vsel %vm114_vm15, %v101_v5, %v104_v10 }
  0x5a   :  { %vm1322_vm3 = vcmp.lt.s32.totalorder %v1321_v12, 0  ;;  %v460_v25 = vsub.s32 0, %v1717_v51  ;;  %v123_v40 = vsel %vm117_vm1, %v110_v18, 920167782  ;;  %v120_v46 = vsel %vm116_vm5, %v104_v10, %v119_v21 }
  0x5b   :  { %v257_v23 = vsel %vm1322_vm3, 0, %v1321_v12  ;;  %v124_v48 = vsel %vm116_vm5, %v107_v15, %v123_v40  ;;  %v126_v50 = vsel %vm114_vm15, %v104_v10, %v107_v15  ;;  %v127_v54 = vsel %vm117_vm1, %v113_v27, 1326507024 }
  0x5c   :  { %v258_v3 = vsub.s32 32, %v257_v23  ;;  %v259_v31 = vshll.u32 %v1678_v30, %v257_v23  ;;  %v262_v34 = vsub.s32 4294967266, %v257_v23  ;;  %v1328_v42 = vmin.u32 %v460_v25, %v1717_v51 }
  0x5d   :  { %v125_v30 = vsel %vm115_vm4, %v122_v11, %v124_v48  ;;  %v273_v37 = vsel %vm188_vm14, %v272_v20, %v1651_v19  ;;  %vm396_vm6 = vcmp.lt.s32.totalorder %v1560_v9, 0  ;;  %v450_v55 = vadd.s32 %v1639_v7, %v1648_v17 }
  0x5e   :  { %v260_v52 = vshrl.u32 %v242_v62, %v258_v3  ;;  %v263_v53 = vadd.s32 127, %v262_v34  ;;  %v462_v36 = vclz %v1328_v42  ;;  %v1323_v56 = vadd.s32 4294967169, %v294_v1 }
  0x5f   :  { %v121_v62 = vsel %vm115_vm4, %v118_v29, %v120_v46  ;;  %v128_v63 = vsel %vm116_vm5, %v110_v18, %v127_v54  ;;  %v1762_v19 = vmul.u32.u64.low %v1711_v0, %v125_v30  ;;  %v1763_v5 = vmul.u32.u64.high %v1711_v0, %v125_v30, %v1762_v19 }
  0x60   :  { %v261_v59 = vor.u32 %v260_v52, %v259_v31  ;;  %v264_v60 = vshll.u32 %v263_v53, 23  ;;  %v1329_v2 = vadd.s32 4294967294, %v462_v36  ;;  %v129_v4 = vsel %vm115_vm4, %v126_v50, %v128_v63 }
  0x61   :  { %v1767_v1 = vmul.u32.u64.low %v1711_v0, %v129_v4  ;;  %v1768_v10 = vmul.u32.u64.high %v1711_v0, %v129_v4, %v1767_v1  ;;  %v275_v12 = vsel %vm1722_vm2, 0, %v273_v37  ;;  %v300_v15 = vadd.s32 1, %v1323_v56 }
  0x62   :  { %v265_v7 = vor.u32 4788187, %v264_v60  ;;  %v268_v17 = vcvt.s32.f32 %v261_v59  ;;  %vm1330_vm7 = vcmp.lt.s32.totalorder %v1329_v2, 0  ;;  %v480_v44 = vsub.s32 4, %v1703_v58 }
  0x63   :  { %v465_v20 = vsel %vm1330_vm7, 0, %v1329_v2  ;;  %v137_v27 = vmul.u32 %v1711_v0, %v121_v62  ;;  %v1516_v21 = vmov 0.0   ;;  %v140_v11 = vadd.s32 1, %v1763_v5 }
  0x64   :  { %v266_v18 = vand.u32 2147483647, %v265_v7  ;;  %897 = vmatprep.mubr.f32.mxu0 %v1516_v21  ;;  %974 = vmatprep.mubr.f32.mxu1 %v1516_v21  ;;  %v466_v23 = vsub.s32 32, %v465_v20  ;;  %v467_v25 = vshll.u32 %v1717_v51, %v465_v20  ;;  %v470_v29 = vsub.s32 4294967266, %v465_v20 }
  0x65   :  { %v279_v31 = vadd.s32 3, %v275_v12  ;;  %vm139_vm8 = vc.u32 %v1768_v10, %v1762_v19  ;;  %vm301_vm9 = vcmp.gt.s32.totalorder %v300_v15, 0  ;;  %v481_v48 = vsel %vm396_vm6, %v480_v44, %v1703_v58 }
  0x66   :  { %v269_v3 = vmul.f32 %v268_v17, %v266_v18  ;;  %v468_v34 = vshrl.u32 %v450_v55, %v466_v23  ;;  %v471_v40 = vadd.s32 127, %v470_v29  ;;  %v141_v0 = vsel %vm139_vm8, %v140_v11, %v1763_v5 }
  0x67   :  { %v302_v42 = vsel %vm301_vm9, %v300_v15, 0  ;;  %v142_v51 = vadd.s32 %v141_v0, %v137_v27  ;;  %vm1786_vm10 = vcmp.le.f32.partialorder %v394_v13, 0.7853982  ;;  %v297_v54 = vand.u32 8388607, %v290_v61 }
  0x68   :  { %v270_v46 = vxor.u32 2147483648, %v269_v3  ;;  %v304_v50 = vand.u32 31, %v302_v42  ;;  %v469_v53 = vor.u32 %v468_v34, %v467_v25  ;;  %v472_v30 = vshll.u32 %v471_v40, 23 }
  0x69   :  { %v1794_v55 = vand.u32 3, %v279_v31  ;;  %v143_v36 = vadd.s32 536870912, %v142_v51  ;;  %v483_v60 = vsel %vm1786_vm10, 0, %v481_v48  ;;  %v298_v17 = vor.u32 8388608, %v297_v54 }
  0x6a   :  { %v271_v37 = vsel %vm188_vm14, %v270_v46, %v269_v3  ;;  %v305_v58 = vsub.s32 32, %v304_v50  ;;  %v473_v13 = vor.u32 4788187, %v472_v30  ;;  %v476_v59 = vcvt.s32.f32 %v469_v53 }
  0x6b   :  { %v274_v56 = vsel %vm1722_vm2, %v1556_v8, %v271_v37  ;;  %v1801_v62 = vshrl.u32 %v143_v36, 30  ;;  %v307_v63 = vshll.u32 %v1510_v41, %v304_v50  ;;  %v310_v5 = vshll.u32 %v1511_v43, %v304_v50 }
  0x6c   :  { %1399 = vcosq.f32 %v274_v56  ;;  %v308_v2 = vshrl.u32 %v1511_v43, %v305_v58  ;;  %v474_v4 = vand.u32 2147483647, %v473_v13  ;;  %v311_v7 = vshrl.u32 %v1512_v45, %v305_v58 }
  0x6d   :  { %1401 = vsinq.f32 %v274_v56  ;;  %v145_v28 = vshll.u32 %v1801_v62, 30  ;;  %v1808_v1 = vshrl.u32 %v302_v42, 5  ;;  %v313_v12 = vshll.u32 %v1512_v45, %v304_v50 }
  0x6e   :  { %v477_v15 = vmul.f32 %v476_v59, %v474_v4  ;;  %v314_v18 = vshrl.u32 %v1513_v47, %v305_v58  ;;  %v316_v20 = vshll.u32 %v1513_v47, %v304_v50  ;;  %v317_v44 = vshrl.u32 %v1514_v49, %v305_v58 }
  0x6f   :  { %v1814_v27 = vsub.s32 %v142_v51, %v145_v28  ;;  %v309_v23 = vor.u32 %v308_v2, %v307_v63  ;;  %v319_v25 = vshll.u32 %v1514_v49, %v304_v50  ;;  %v72_v29 = vcombine.low %v1689_v32, %v1689_v32 }
  0x70   :  { %v478_v11 = vxor.u32 2147483648, %v477_v15  ;;  %v312_v3 = vor.u32 %v311_v7, %v310_v5  ;;  %v318_v31 = vor.u32 %v317_v44, %v316_v20  ;;  %v320_v34 = vshrl.u32 %v1515_v57, %v305_v58 }
  0x71   :  { %vm282_vm11 = vcmp.eq.s32.totalorder %v1794_v55, 0  ;;  %v487_v40 = vadd.s32 3, %v483_v60  ;;  %v148_v0 = vsub.s32 0, %v1814_v27  ;;  %vm322_vm12 = vcmp.lt.s32.totalorder %v1808_v1, 1 }
  0x72   :  { %v1823_v42 = vshll.u32 %v298_v17, 8  ;;  %vm281_vm13 = vcmp.lt.s32.totalorder %v1794_v55, 2  ;;  %v479_v46 = vsel %vm396_vm6, %v478_v11, %v477_v15  ;;  %v306_v32 = vshrl.u32 %v1510_v41, %v305_v58 }
  0x73   :  { %v315_v48 = vor.u32 %v314_v18, %v313_v12  ;;  %vm325_vm14 = vcmp.lt.s32.totalorder %v1808_v1, 4  ;;  %vm278_vm15 = vweird.f32 %v1556_v8  ;;  %v482_v51 = vsel %vm1786_vm10, %v1560_v9, %v479_v46 }
  0x74   :  { %v1316_v50 = vmin.u32 %v148_v0, %v1814_v27  ;;  %v321_v53 = vor.u32 %v320_v34, %v319_v25  ;;  %vm324_vm1 = vcmp.lt.s32.totalorder %v1808_v1, 3  ;;  %1403 = vcosq.f32 %v482_v51 }
  0x75   :  { %vm323_vm2 = vcmp.lt.s32.totalorder %v1808_v1, 2  ;;  %v330_v30 = vsel %vm322_vm12, %v309_v23, %v312_v3  ;;  %v331_v54 = vsel %vm325_vm14, %v318_v31, 920167782  ;;  %vm285_vm3 = vcmp.eq.s32.totalorder %v1794_v55, 2 }
  0x76   :  { %1405 = vsinq.f32 %v482_v51  ;;  %v150_v37 = vclz %v1316_v50  ;;  %v327_v52 = vsel %vm325_vm14, %v315_v48, 2102212464  ;;  %vm627_vm4 = vcmask 1040384  }
  0x77   :  { %v1844_v36 = vand.u32 3, %v487_v40  ;;  %v332_v58 = vsel %vm324_vm1, %v315_v48, %v331_v54  ;;  %v334_v56 = vsel %vm322_vm12, %v312_v3, %v315_v48  ;;  %v1852_v13 = vsel %vm76_vm0, %v1656_v22, %v72_v29 }
  0x78   :  { %vm84_vm5 = vcmp.lt.s32.totalorder %v1567_v16, 0  ;;  %v1317_v59 = vadd.s32 4294967294, %v150_v37  ;;  %v326_v60 = vsel %vm322_vm12, %v306_v32, %v309_v23  ;;  %v333_v63 = vsel %vm323_vm2, %v330_v30, %v332_v58 }
  0x79   :  { %v335_v2 = vsel %vm325_vm14, %v321_v53, 1326507024  ;;  %v1400_v4 = vpop.eup %1399  ;;  %v328_v5 = vsel %vm324_vm1, %v312_v3, %v327_v52  ;;  %v1866_v7 = vmul.u32.u64.low %v1823_v42, %v333_v63  ;;  %v1867_v28 = vmul.u32.u64.high %v1823_v42, %v333_v63, %v1866_v7 }
  0x7a   :  { %v336_v22 = vsel %vm324_vm1, %v318_v31, %v335_v2  ;;  %v1402_v17 = vpop.eup %1401  ;;  %v286_v12 = vxor.u32 2147483648, %v1400_v4  ;;  %v138_v15 = vadd.s32 %v1762_v19, %v1768_v10  ;;  %vm1318_vm6 = vcmp.lt.s32.totalorder %v1317_v59, 0 }
  0x7b   :  { %v337_v18 = vsel %vm323_vm2, %v334_v56, %v336_v22  ;;  %v283_v20 = vxor.u32 2147483648, %v1402_v17  ;;  %v153_v44 = vsel %vm1318_vm6, 0, %v1317_v59  ;;  %vm698_vm7 = vcmask 1041408  }
  0x7c   :  { %v1875_v23 = vmul.u32.u64.low %v1823_v42, %v337_v18  ;;  %v1876_v25 = vmul.u32.u64.high %v1823_v42, %v337_v18, %v1875_v23  ;;  %v287_v29 = vsel %vm285_vm3, %v286_v12, %v1402_v17  ;;  %vm489_vm8 = vcmp.lt.s32.totalorder %v1844_v36, 2 }
  0x7d   :  { %v154_v11 = vsub.s32 32, %v153_v44  ;;  %v158_v3 = vsub.s32 4294967266, %v153_v44  ;;  %v329_v19 = vsel %vm323_vm2, %v326_v60, %v328_v5  ;;  %v284_v10 = vsel %vm282_vm11, %v1400_v4, %v283_v20 }
  0x7e   :  { %vm486_vm9 = vweird.f32 %v1560_v9  ;;  %vm1888_vm10 = vcmp.le.f32.partialorder %v82_v35, 0.7853982  ;;  %v155_v34 = vshll.u32 %v1814_v27, %v153_v44  ;;  %v168_v40 = vsub.s32 4, %v1801_v62 }
  0x7f   :  { %v501_v0 = vand.u32 2139095040, %v1852_v13  ;;  %v288_v1 = vsel %vm281_vm13, %v284_v10, %v287_v29  ;;  %v156_v46 = vshrl.u32 %v138_v15, %v154_v11  ;;  %v159_v32 = vadd.s32 127, %v158_v3 }
  0x80   :  { %v348_v48 = vadd.s32 1, %v1867_v28  ;;  %v1900_v51 = vsel %vm278_vm15, nan, %v288_v1  ;;  %vm490_vm11 = vcmp.eq.s32.totalorder %v1844_v36, 0  ;;  %v345_v35 = vmul.u32 %v1823_v42, %v329_v19 }
  0x81   :  { %vm347_vm12 = vc.u32 %v1876_v25, %v1866_v7  ;;  %v608_v27 = vrot.slane %v1900_v51, 7  ;;  %v618_v55 = vrot.slane %v1900_v51, 2  ;;  %v640_v50 = vrot.slane %v1900_v51, %v1660_v24  ;;  %v1404_v54 = vpop.eup %1403 }
  0x82   :  { %v665_v53 = vrot.slane %v1900_v51, %v1671_v38  ;;  %v711_v8 = vrot.slane %v1900_v51, %v1674_v26  ;;  %vm493_vm13 = vcmp.eq.s32.totalorder %v1844_v36, 2  ;;  %v169_v42 = vsel %vm84_vm5, %v168_v40, %v1801_v62 }
  0x83   :  { %v502_v30 = vshrl.u32 %v501_v0, 23  ;;  %v629_v37 = vsel %vm627_vm4, %v608_v27, %v618_v55  ;;  %v157_v52 = vor.u32 %v156_v46, %v155_v34  ;;  %v160_v58 = vshll.u32 %v159_v32, 23  ;;  %v1406_v59 = vpop.eup %1405 }
  0x84   :  { %v349_v56 = vsel %vm347_vm12, %v348_v48, %v1867_v28  ;;  %v654_v60 = vmul.f32 %v640_v50, %v629_v37  ;;  %v679_v63 = vmul.f32 %v665_v53, %v629_v37  ;;  %v494_v2 = vxor.u32 2147483648, %v1404_v54 }
  0x85   :  { %v350_v4 = vadd.s32 %v349_v56, %v345_v35  ;;  %v736_v5 = vrot.slane %v1900_v51, %v1681_v33  ;;  %v491_v22 = vxor.u32 2147483648, %v1406_v59  ;;  %v161_v17 = vor.u32 4788187, %v160_v58 }
  0x86   :  { %v164_v12 = vcvt.s32.f32 %v157_v52  ;;  %v689_v62 = vrot.slane %v679_v63, 6  ;;  %v495_v15 = vsel %vm493_vm13, %v494_v2, %v1406_v59  ;;  %v498_v20 = vand.u32 2147483647, %v1852_v13 }
  0x87   :  { %v351_v18 = vadd.s32 536870912, %v350_v4  ;;  %v492_v28 = vsel %vm490_vm11, %v1404_v54, %v491_v22  ;;  %v162_v44 = vand.u32 2147483647, %v161_v17  ;;  %v171_v23 = vsel %vm1888_vm10, 0, %v169_v42 }
  0x88   :  { %v1331_v29 = vadd.s32 4294967169, %v502_v30  ;;  %v700_v11 = vsel %vm698_vm7, %v654_v60, %v689_v62  ;;  %v806_v3 = vrot.slane %v1900_v51, %v1684_v6  ;;  %v496_v19 = vsel %vm489_vm8, %v492_v28, %v495_v15 }
  0x89   :  { %v1934_v10 = vshrl.u32 %v351_v18, 30  ;;  %v725_v34 = vmul.f32 %v711_v8, %v700_v11  ;;  %v750_v40 = vmul.f32 %v736_v5, %v700_v11  ;;  %v1938_v0 = vsel %vm486_vm9, nan, %v496_v19 }
  0x8a   :  { %v165_v1 = vmul.f32 %v164_v12, %v162_v44  ;;  %v610_v46 = vrot.slane %v1938_v0, 7  ;;  %v620_v32 = vrot.slane %v1938_v0, 2  ;;  %v648_v48 = vrot.slane %v1938_v0, %v1660_v24 }
  0x8b   :  { %v673_v36 = vrot.slane %v1938_v0, %v1671_v38  ;;  %v760_v35 = vrot.slane %v750_v40, 4  ;;  %v175_v27 = vadd.s32 3, %v171_v23  ;;  %v508_v55 = vadd.s32 1, %v1331_v29 }
  0x8c   :  { %v631_v50 = vsel %vm627_vm4, %v610_v46, %v620_v32  ;;  %v166_v53 = vxor.u32 2147483648, %v165_v1  ;;  %v353_v9 = vshll.u32 %v1934_v10, 30  ;;  %v505_v8 = vand.u32 8388607, %v498_v20 }
  0x8d   :  { %v1951_v42 = vsel %vm76_vm0, %v725_v34, %v760_v35  ;;  %v656_v30 = vmul.f32 %v648_v48, %v631_v50  ;;  %v681_v54 = vmul.f32 %v673_v36, %v631_v50  ;;  %v719_v37 = vrot.slane %v1938_v0, %v1674_v26 }
  0x8e   :  { %v820_v52 = vmul.f32 %v806_v3, %v1951_v42  ;;  %v744_v58 = vrot.slane %v1938_v0, %v1681_v33  ;;  %v167_v56 = vsel %vm84_vm5, %v166_v53, %v165_v1  ;;  %v1960_v59 = vsub.s32 %v350_v4, %v353_v9 }
  0x8f   :  { %v691_v60 = vrot.slane %v681_v54, 6  ;;  %v170_v63 = vsel %vm1888_vm10, %v1567_v16, %v167_v56  ;;  %vm509_vm14 = vcmp.gt.s32.totalorder %v508_v55, 0  ;;  %v1965_v2 = vand.u32 3, %v175_v27 }
  0x90   :  { %861 = vmatprep.subr.mxu0 %v820_v52  ;;  %1407 = vcosq.f32 %v170_v63  ;;  %v356_v5 = vsub.s32 0, %v1960_v59  ;;  %v510_v22 = vsel %vm509_vm14, %v508_v55, 0  ;;  %v506_v12 = vor.u32 8388608, %v505_v8 }
  0x91   :  { %v702_v17 = vsel %vm698_vm7, %v656_v30, %v691_v60  ;;  %1409 = vsinq.f32 %v170_v63  ;;  %v1969_v62 = vshrl.u32 %v510_v22, 5  ;;  %v512_v31 = vand.u32 31, %v510_v22 }
  0x92   :  { %v727_v4 = vmul.f32 %v719_v37, %v702_v17  ;;  %v752_v15 = vmul.f32 %v744_v58, %v702_v17  ;;  %v1324_v18 = vmin.u32 %v356_v5, %v1960_v59  ;;  %v814_v28 = vrot.slane %v1938_v0, %v1684_v6 }
  0x93   :  { %v513_v29 = vsub.s32 32, %v512_v31  ;;  %v515_v11 = vshll.u32 %v1510_v41, %v512_v31  ;;  %vm181_vm15 = vcmp.eq.s32.totalorder %v1965_v2, 2  ;;  %v346_v3 = vadd.s32 %v1866_v7, %v1876_v25 }
  0x94   :  { %v762_v44 = vrot.slane %v752_v15, 4  ;;  %v358_v23 = vclz %v1324_v18  ;;  %v518_v19 = vshll.u32 %v1511_v43, %v512_v31  ;;  %vm530_vm1 = vcmp.lt.s32.totalorder %v1969_v62, 1 }
  0x95   :  { %v1980_v34 = vshll.u32 %v506_v12, 8  ;;  %v516_v46 = vshrl.u32 %v1511_v43, %v513_v29  ;;  %vm531_vm2 = vcmp.lt.s32.totalorder %v1969_v62, 2  ;;  %vm177_vm3 = vcmp.lt.s32.totalorder %v1965_v2, 2 }
  0x96   :  { %v1983_v40 = vsel %vm76_vm0, %v727_v4, %v762_v44  ;;  %v1325_v1 = vadd.s32 4294967294, %v358_v23  ;;  %v514_v7 = vshrl.u32 %v1510_v41, %v513_v29  ;;  %v519_v25 = vshrl.u32 %v1512_v45, %v513_v29 }
  0x97   :  { %v822_v32 = vmul.f32 %v814_v28, %v1983_v40  ;;  %v521_v48 = vshll.u32 %v1512_v45, %v512_v31  ;;  %vm174_vm5 = vweird.f32 %v1567_v16  ;;  %v517_v36 = vor.u32 %v516_v46, %v515_v11 }
  0x98   :  { %vm1326_vm6 = vcmp.lt.s32.totalorder %v1325_v1, 0  ;;  %v522_v35 = vshrl.u32 %v1513_v47, %v513_v29  ;;  %v524_v43 = vshll.u32 %v1513_v47, %v512_v31  ;;  %v520_v55 = vor.u32 %v519_v25, %v518_v19 }
  0x99   :  { %938 = vmatprep.subr.mxu1 %v822_v32  ;;  %v361_v27 = vsel %vm1326_vm6, 0, %v1325_v1  ;;  %v525_v50 = vshrl.u32 %v1514_v49, %v513_v29  ;;  %v527_v53 = vshll.u32 %v1514_v49, %v512_v31  ;;  %v528_v54 = vshrl.u32 %v1515_v57, %v513_v29 }
  0x9a   :  { %v362_v41 = vsub.s32 32, %v361_v27  ;;  %v363_v9 = vshll.u32 %v1960_v59, %v361_v27  ;;  %v366_v8 = vsub.s32 4294967266, %v361_v27  ;;  %v523_v45 = vor.u32 %v522_v35, %v521_v48 }
  0x9b   :  { %v526_v30 = vor.u32 %v525_v50, %v524_v43  ;;  %vm532_vm8 = vcmp.lt.s32.totalorder %v1969_v62, 3  ;;  %vm533_vm9 = vcmp.lt.s32.totalorder %v1969_v62, 4  ;;  %v534_v52 = vsel %vm530_vm1, %v514_v7, %v517_v36 }
  0x9c   :  { %v364_v47 = vshrl.u32 %v346_v3, %v362_v41  ;;  %v367_v37 = vadd.s32 127, %v366_v8  ;;  %v535_v49 = vsel %vm533_vm9, %v523_v45, 2102212464  ;;  %v529_v56 = vor.u32 %v528_v54, %v527_v53 }
  0x9d   :  { %v1408_v58 = vpop.eup %1407  ;;  %v536_v59 = vsel %vm532_vm8, %v520_v55, %v535_v49  ;;  %v538_v57 = vsel %vm530_vm1, %v517_v36, %v520_v55  ;;  %v539_v60 = vsel %vm533_vm9, %v526_v30, 920167782  ;;  %vm178_vm10 = vcmp.eq.s32.totalorder %v1965_v2, 0 }
  0x9e   :  { %v1410_v63 = vpop.eup %1409  ;;  %v182_v5 = vxor.u32 2147483648, %v1408_v58  ;;  %v365_v22 = vor.u32 %v364_v47, %v363_v9  ;;  %v368_v17 = vshll.u32 %v367_v37, 23  ;;  %v540_v4 = vsel %vm532_vm8, %v523_v45, %v539_v60 }
  0x9f   :  { %v179_v12 = vxor.u32 2147483648, %v1410_v63  ;;  %v542_v15 = vsel %vm530_vm1, %v520_v55, %v523_v45  ;;  %v543_v18 = vsel %vm533_vm9, %v529_v56, 1326507024  ;;  %v537_v44 = vsel %vm531_vm2, %v534_v52, %v536_v59 }
  0xa0   :  { %v183_v31 = vsel %vm181_vm15, %v182_v5, %v1410_v63  ;;  %v369_v28 = vor.u32 4788187, %v368_v17  ;;  %v541_v23 = vsel %vm531_vm2, %v538_v57, %v540_v4  ;;  %v544_v11 = vsel %vm532_vm8, %v526_v30, %v543_v18 }
  0xa1   :  { %v180_v29 = vsel %vm178_vm10, %v1408_v58, %v179_v12  ;;  %v2027_v3 = vmul.u32.u64.low %v1980_v34, %v541_v23  ;;  %v2028_v19 = vmul.u32.u64.high %v1980_v34, %v541_v23, %v2027_v3  ;;  %v372_v32 = vcvt.s32.f32 %v365_v22 }
  0xa2   :  { %v184_v1 = vsel %vm177_vm3, %v180_v29, %v183_v31  ;;  %v370_v46 = vand.u32 2147483647, %v369_v28  ;;  %v545_v7 = vsel %vm531_vm2, %v542_v15, %v544_v11  ;;  %v2044_v2 = vsub.s32 4, %v1644_v14 }
  0xa3   :  { %v185_v25 = vsel %vm174_vm5, nan, %v184_v1  ;;  %v2038_v48 = vmul.u32.u64.low %v1980_v34, %v545_v7  ;;  %v2039_v36 = vmul.u32.u64.high %v1980_v34, %v545_v7, %v2038_v48  ;;  %vm292_vm11 = vcmp.lt.s32.totalorder %v1668_v39, 0 }
  0xa4   :  { %v607_v35 = vrot.slane %v185_v25, 7  ;;  %v617_v43 = vrot.slane %v185_v25, 2  ;;  %v636_v27 = vrot.slane %v185_v25, %v1660_v24  ;;  %v661_v55 = vrot.slane %v185_v25, %v1671_v38 }
  0xa5   :  { %v553_v62 = vmul.u32 %v1980_v34, %v537_v44  ;;  %vm2051_vm12 = vcmp.le.f32.partialorder %v290_v61, 0.7853982  ;;  %v373_v53 = vmul.f32 %v372_v32, %v370_v46  ;;  %v556_v41 = vadd.s32 1, %v2028_v19  ;;  %v2082_v44 = vld [vmem:[#allocation5] sm:$0xff] }
  0xa6   :  { %v628_v16 = vsel %vm627_vm4, %v607_v35, %v617_v43  ;;  %v376_v14 = vsub.s32 4, %v1934_v10  ;;  %vm555_vm13 = vc.u32 %v2039_v36, %v2027_v3  ;;  %v707_v34 = vrot.slane %v185_v25, %v1674_v26 }
  0xa7   :  { %v653_v9 = vmul.f32 %v636_v27, %v628_v16  ;;  %v678_v8 = vmul.f32 %v661_v55, %v628_v16  ;;  %v732_v45 = vrot.slane %v185_v25, %v1681_v33  ;;  %v374_v30 = vxor.u32 2147483648, %v373_v53 }
  0xa8   :  { %v557_v61 = vsel %vm555_vm13, %v556_v41, %v2028_v19  ;;  %v377_v49 = vsel %vm292_vm11, %v376_v14, %v1934_v10  ;;  %v781_v59 = vrot.slane %v1900_v51, %v2044_v2  ;;  %v777_v63 = vrot.slane %v185_v25, %v2044_v2 }
  0xa9   :  { %v688_v54 = vrot.slane %v678_v8, 6  ;;  %v558_v47 = vadd.s32 %v557_v61, %v553_v62  ;;  %v375_v37 = vsel %vm292_vm11, %v374_v30, %v373_v53  ;;  %v802_v5 = vrot.slane %v185_v25, %v1684_v6 }
  0xaa   :  { %v378_v58 = vsel %vm2051_vm12, %v1668_v39, %v375_v37  ;;  %v379_v10 = vsel %vm2051_vm12, 0, %v377_v49  ;;  %v795_v4 = vmul.f32 %v781_v59, %v1951_v42  ;;  %vm826_vm14 = vcmask 130048   ;;  %v2087_v42 = vld [vmem:[#allocation5 + $0x8] sm:$0xff] }
  0xab   :  { %v699_v52 = vsel %vm698_vm7, %v653_v9, %v688_v54  ;;  %v559_v56 = vadd.s32 536870912, %v558_v47  ;;  %1411 = vcosq.f32 %v378_v58  ;;  %v383_v31 = vadd.s32 3, %v379_v10 }
  0xac   :  { %v724_v57 = vmul.f32 %v707_v34, %v699_v52  ;;  %v749_v60 = vmul.f32 %v732_v45, %v699_v52  ;;  %1413 = vsinq.f32 %v378_v58  ;;  %v554_v48 = vadd.s32 %v2027_v3, %v2039_v36 }
  0xad   :  { %v2075_v22 = vshrl.u32 %v559_v56, 30  ;;  %v384_v29 = vand.u32 3, %v383_v31  ;;  %vm382_vm5 = vweird.f32 %v1668_v39  ;;  %v789_v59 = vrot.slane %v1938_v0, %v2044_v2 }
  0xae   :  { %v759_v17 = vrot.slane %v749_v60, 4  ;;  %vm500_vm6 = vcmp.lt.s32.totalorder %v1852_v13, 0  ;;  %vm2110_vm8 = vcmp.le.f32.partialorder %v498_v20, 0.7853982  ;;  %vm590_vm12 = vweird.f32 %v1852_v13 }
  0xaf   :  { %v561_v12 = vshll.u32 %v2075_v22, 30  ;;  %vm389_vm15 = vcmp.eq.s32.totalorder %v384_v29, 2  ;;  %vm386_vm1 = vcmp.eq.s32.totalorder %v384_v29, 0  ;;  %vm385_vm2 = vcmp.lt.s32.totalorder %v384_v29, 2 }
  0xb0   :  { %v769_v51 = vsel %vm76_vm0, %v724_v57, %v759_v17  ;;  %v584_v10 = vsub.s32 4, %v2075_v22  ;;  %v797_v0 = vmul.f32 %v789_v59, %v1983_v40 }
  0xb1   :  { %v794_v15 = vmul.f32 %v777_v63, %v769_v51  ;;  %v819_v18 = vmul.f32 %v802_v5, %v769_v51  ;;  %v562_v28 = vsub.s32 %v558_v47, %v561_v12 }
  0xb3   :  { %862 = vmatpush1.msra.mxu0 %v819_v18  ;;  %v564_v23 = vsub.s32 0, %v562_v28 }
  0xb4   :  { %863 = vmatprep.subr.mxu0 %v795_v4 }
  0xb5   :  { %864 = vmatpush1.msra.mxu0 %v794_v15  ;;  %v1332_v11 = vmin.u32 %v564_v23, %v562_v28  ;;  %v585_v23 = vsel %vm500_vm6, %v584_v10, %v2075_v22 }
  0xb6   :  { %1335 = vmatmul.mubr.msk.f32.vlgmr.msra.gmra.mxu0 %vm826_vm14, %v2082_v44  ;;  %v587_v20 = vsel %vm2110_vm8, 0, %v585_v23 }
  0xb7   :  { %903 = vmatprep.mubr.f32.mxu0 %v1516_v21  ;;  %v566_v19 = vclz %v1332_v11  ;;  %v591_v40 = vadd.s32 3, %v587_v20 }
  0xb8   :  { %v1412_v1 = vpop.eup %1411 }
  0xb9   :  { %v1333_v46 = vadd.s32 4294967294, %v566_v19  ;;  %v1414_v32 = vpop.eup %1413  ;;  %v390_v7 = vxor.u32 2147483648, %v1412_v1  ;;  %v592_v22 = vand.u32 3, %v591_v40 }
  0xba   :  { %1336 = vmatmul.mubr.msk.f32.gmra.mxu0 %vm826_vm14, %v2087_v42  ;;  %v387_v25 = vxor.u32 2147483648, %v1414_v32 }
  0xbb   :  { %vm1334_vm3 = vcmp.lt.s32.totalorder %v1333_v46, 0  ;;  %1355 = vmatprep.mubr.msk.f32.mxu0 %vm826_vm14, %v2082_v44  ;;  %v391_v35 = vsel %vm389_vm15, %v390_v7, %v1414_v32  ;;  %vm597_vm9 = vcmp.eq.s32.totalorder %v592_v22, 2  ;;  %vm594_vm10 = vcmp.eq.s32.totalorder %v592_v22, 0 }
  0xbc   :  { %v569_v43 = vsel %vm1334_vm3, 0, %v1333_v46  ;;  %v388_v27 = vsel %vm386_vm1, %v1412_v1, %v387_v25  ;;  %vm593_vm11 = vcmp.lt.s32.totalorder %v592_v22, 2 }
  0xbd   :  { %v570_v55 = vsub.s32 32, %v569_v43  ;;  %v574_v62 = vsub.s32 4294967266, %v569_v43  ;;  %v392_v16 = vsel %vm385_vm2, %v388_v27, %v391_v35  ;;  %v571_v50 = vshll.u32 %v562_v28, %v569_v43 }
  0xbe   :  { %v393_v53 = vsel %vm382_vm5, nan, %v392_v16 }
  0xbf   :  { %v572_v41 = vshrl.u32 %v554_v48, %v570_v55  ;;  %v575_v9 = vadd.s32 127, %v574_v62  ;;  %v609_v8 = vrot.slane %v393_v53, 7  ;;  %v619_v14 = vrot.slane %v393_v53, 2 }
  0xc0   :  { %v644_v3 = vrot.slane %v393_v53, %v1660_v24  ;;  %v669_v36 = vrot.slane %v393_v53, %v1671_v38  ;;  %v715_v54 = vrot.slane %v393_v53, %v1674_v26  ;;  %v740_v47 = vrot.slane %v393_v53, %v1681_v33 }
  0xc1   :  { %v630_v34 = vsel %vm627_vm4, %v609_v8, %v619_v14  ;;  %v573_v45 = vor.u32 %v572_v41, %v571_v50  ;;  %v576_v39 = vshll.u32 %v575_v9, 23  ;;  %v785_v5 = vrot.slane %v393_v53, %v2044_v2 }
  0xc2   :  { %v655_v30 = vmul.f32 %v644_v3, %v630_v34  ;;  %v680_v61 = vmul.f32 %v669_v36, %v630_v34  ;;  %v810_v17 = vrot.slane %v393_v53, %v1684_v6 }
  0xc3   :  { %v577_v37 = vor.u32 4788187, %v576_v39  ;;  %v580_v52 = vcvt.s32.f32 %v573_v45 }
  0xc4   :  { %v690_v49 = vrot.slane %v680_v61, 6 }
  0xc5   :  { %v578_v58 = vand.u32 2147483647, %v577_v37 }
  0xc6   :  { %v701_v56 = vsel %vm698_vm7, %v655_v30, %v690_v49 }
  0xc7   :  { %v726_v57 = vmul.f32 %v715_v54, %v701_v56  ;;  %v751_v60 = vmul.f32 %v740_v47, %v701_v56  ;;  %v581_v63 = vmul.f32 %v580_v52, %v578_v58  ;;  %v1072_v54 = vld [vmem:[#allocation7] sm:$0xf] }
  0xc9   :  { %v761_v12 = vrot.slane %v751_v60, 4  ;;  %v582_v51 = vxor.u32 2147483648, %v581_v63 }
  0xcb   :  { %v771_v15 = vsel %vm76_vm0, %v726_v57, %v761_v12  ;;  %v583_v18 = vsel %vm500_vm6, %v582_v51, %v581_v63 }
  0xcc   :  { %v796_v31 = vmul.f32 %v785_v5, %v771_v15  ;;  %v821_v28 = vmul.f32 %v810_v17, %v771_v15  ;;  %v586_v29 = vsel %vm2110_vm8, %v1852_v13, %v583_v18 }
  0xcd   :  { %1415 = vcosq.f32 %v586_v29 }
  0xce   :  { %939 = vmatpush1.msra.mxu1 %v821_v28  ;;  %1417 = vsinq.f32 %v586_v29 }
  0xcf   :  { %940 = vmatprep.subr.mxu1 %v797_v0 }
  0xd0   :  { %941 = vmatpush1.msra.mxu1 %v796_v31 }
  0xd1   :  { %1337 = vmatmul.mubr.msk.f32.vlgmr.msra.gmra.mxu1 %vm826_vm14, %v2082_v44 }
  0xd2   :  { %980 = vmatprep.mubr.f32.mxu1 %v1516_v21 }
  0xd5   :  { %1338 = vmatmul.mubr.msk.f32.gmra.mxu1 %vm826_vm14, %v2087_v42 }
  0xd6   :  { %1140 = vmatprep.mubr.f32.mxu1 %v1516_v21 }
  0xda   :  { %v1416_v11 = vpop.eup %1415 }
  0xdb   :  { %v1418_v19 = vpop.eup %1417  ;;  %v598_v1 = vxor.u32 2147483648, %v1416_v11 }
  0xdc   :  { %v595_v46 = vxor.u32 2147483648, %v1418_v19 }
  0xdd   :  { %v599_v32 = vsel %vm597_vm9, %v598_v1, %v1418_v19 }
  0xde   :  { %v596_v44 = vsel %vm594_vm10, %v1416_v11, %v595_v46 }
  0xdf   :  { %v600_v7 = vsel %vm593_vm11, %v596_v44, %v599_v32 }
  0xe0   :  { %v601_v25 = vsel %vm590_vm12, nan, %v600_v7 }
  0xe1   :  { %v611_v48 = vrot.slane %v601_v25, 7  ;;  %v621_v35 = vrot.slane %v601_v25, 2  ;;  %v652_v43 = vrot.slane %v601_v25, %v1660_v24  ;;  %v677_v27 = vrot.slane %v601_v25, %v1671_v38 }
  0xe2   :  { %v723_v50 = vrot.slane %v601_v25, %v1674_v26  ;;  %v748_v53 = vrot.slane %v601_v25, %v1681_v33  ;;  %v818_v14 = vrot.slane %v601_v25, %v1684_v6  ;;  %v793_v3 = vrot.slane %v601_v25, %v2044_v2 }
  0xe3   :  { %v632_v55 = vsel %vm627_vm4, %v611_v48, %v621_v35 }
  0xe4   :  { %v657_v62 = vmul.f32 %v652_v43, %v632_v55  ;;  %v682_v16 = vmul.f32 %v677_v27, %v632_v55 }
  0xe6   :  { %v692_v41 = vrot.slane %v682_v16, 6 }
  0xe8   :  { %v703_v13 = vsel %vm698_vm7, %v657_v62, %v692_v41 }
  0xe9   :  { %v728_v9 = vmul.f32 %v723_v50, %v703_v13  ;;  %v753_v8 = vmul.f32 %v748_v53, %v703_v13 }
  0xeb   :  { %v763_v24 = vrot.slane %v753_v8, 4 }
  0xed   :  { %v773_v38 = vsel %vm76_vm0, %v728_v9, %v763_v24  ;;  %vm1517_vm0 = vmmov 0  }
  0xee   :  { %v823_v36 = vmul.f32 %v818_v14, %v773_v38  ;;  %v798_v34 = vmul.f32 %v793_v3, %v773_v38 }
  0xf0   :  { %1351 = vmatprep.subr.mxu0 %v823_v36 }
  0xf1   :  { %1352 = vmatpush3.msra.mxu0 %v823_v36 }
  0xf2   :  { %1353 = vmatprep.subr.mxu0 %v798_v34 }
  0xf3   :  { %1354 = vmatpush3.msra.mxu0 %v798_v34 }
  0xf4   :  { %1356 = vmatmul.mubr.msk.f32.vlgmr.msra.gmra.mxu0 %vm826_vm14, %v2087_v42 }
  0xf5   :  { %1211 = vmatprep.mubr.f32.mxu0 %v1516_v21 }
 0x176   :  { %v899_v26 = vpop.f32.mrf.mxu0 }
 0x177   :  { %v1062_v61 = vmul.f32 %v899_v26, %v899_v26 }
 0x178   :  { %v901_v33 = vpop.f32.mrf.mxu0 }
 0x179   :  { %v1063_v30 = vmul.f32 %v901_v33, %v901_v33 }
 0x17a   :  { %v905_v45 = vpop.f32.mrf.mxu0 }
 0x17b   :  { %v1067_v2 = vmul.f32 %v905_v45, %v905_v45 }
 0x17c   :  { %v907_v6 = vpop.f32.mrf.mxu0 }
 0x17d   :  { %v1068_v39 = vmul.f32 %v907_v6, %v907_v6 }
 0x17f   :  { %1104 = vmatprep.subr.mxu1 %v1068_v39 }
 0x180   :  { %1105 = vmatpush1.msra.mxu1 %v1067_v2 }
 0x181   :  { %1106 = vmatprep.subr.mxu1 %v1063_v30 }
 0x182   :  { %1107 = vmatpush1.msra.mxu1 %v1062_v61 }
 0x183   :  { %1358 = vmatprep.subr.mxu1 %v1516_v21  ;;  %1341 = vmatmul.mubr.msk.f32.vlgmr.msra.gmra.mxu1 %vm826_vm14, %v1072_v54 }
 0x184   :  { %1362 = vmatprep.mubr.msk.f32.mxu1 %vm1517_vm0, %v1516_v21 }
 0x191   :  { %v976_v42 = vpop.f32.mrf.mxu1 }
 0x192   :  { %v1064_v59 = vmul.f32 %v976_v42, %v976_v42 }
 0x193   :  { %v978_v47 = vpop.f32.mrf.mxu1 }
 0x194   :  { %v1065_v56 = vmul.f32 %v978_v47, %v978_v47 }
 0x195   :  { %v982_v37 = vpop.f32.mrf.mxu1 }
 0x196   :  { %v1069_v58 = vmul.f32 %v982_v37, %v982_v37 }
 0x197   :  { %v984_v52 = vpop.f32.mrf.mxu1 }
 0x198   :  { %v1070_v49 = vmul.f32 %v984_v52, %v984_v52 }
 0x19a   :  { %1175 = vmatprep.subr.mxu0 %v1070_v49 }
 0x19b   :  { %1176 = vmatpush1.msra.mxu0 %v1069_v58 }
 0x19c   :  { %1177 = vmatprep.subr.mxu0 %v1065_v56 }
 0x19d   :  { %1178 = vmatpush1.msra.mxu0 %v1064_v59 }
 0x19e   :  { %1342 = vmatmul.mubr.msk.f32.vlgmr.msra.gmra.mxu0 %vm826_vm14, %v1072_v54 }
 0x1b4   :  { %v1357_v57 = vpop.f32.mrf.mxu0 }
 0x1b5   :  { %v1071_v60 = vmul.f32 %v1357_v57, %v1357_v57 }
 0x1b6   :  { %v1053_v63 = vpop.f32.mrf.mxu0 }
 0x1b7   :  { %v1066_v5 = vmul.f32 %v1053_v63, %v1053_v63  ;;  %1359 = vmatpush3.msra.mxu1 %v1071_v60 }
 0x1b8   :  { %1360 = vmatprep.subr.mxu1 %v1516_v21 }
 0x1b9   :  { %1361 = vmatpush3.msra.mxu1 %v1066_v5 }
 0x1ba   :  { %1363 = vmatmul.mubr.msk.f32.vlgmr.msra.gmra.mxu1 %vm826_vm14, %v1072_v54 }
 0x243   :  { %v1142_v17 = vpop.f32.mrf.mxu1 }
 0x245   :  { %v1144_v10 = vpop.f32.mrf.mxu1 }
 0x246   :  { %v1292_v12 = vcombine.low %v1142_v17, %v1144_v10 }
 0x248   :  { %1296 = vst [vmem:[#allocation8] sm:$0xff] %v1292_v12 }
 0x25e   :  { %v1213_v4 = vpop.f32.mrf.mxu0 }
 0x260   :  { %v1215_v51 = vpop.f32.mrf.mxu0 }
 0x261   :  { %v1293_v0 = vcombine.low %v1213_v4, %v1215_v51 }
 0x263   :  { %1297 = vst [vmem:[#allocation8 + $0x8] sm:$0xff] %v1293_v0 }
 0x27a   :  { %v1284_v15 = vpop.f32.mrf.mxu1 }
 0x27b   :  { %1298 = vst [vmem:[#allocation8 + $0x10] sm:$0xf] %v1284_v15 }
 0x27c   :  { %v1364_v18 = vpop.f32.mrf.mxu1 }
 0x27d   :  { %1490 = shalt.err (!%p1487_p5)
}
 0x27e   :  { %1308 = dma.vmem_to_hbm [thread:$0]  %s1306_s2, 320, %s2153_s3, [#allocation4]  }
 0x27f   :  { %1503 = dma.done.wait [#allocation4], 320  }
 0x280   :  { %1504 = vsyncadd [#allocation4], 4294966976 }
 0x281   :  { %1312 = vsyncpa [#allocation3], 1 }
 0x282   :  { %1313 = vsyncpa [#allocation6], 1 }
 0x283   :  { %1314 = vsyncpa [#allocation4], 1 }

</bundles_post_ra>
